<compile_context>
chip_gen: v7x
topology: tpu7x:2x2x1
jax: 0.10.0
libtpu: 0.0.40
codegen_flags: <defaults>
</compile_context>

<pallas_src>
import functools

import jax
import jax.numpy as jnp
from jax.experimental import pallas as pl
from jax.experimental.pallas import tpu as pltpu

NUM_HIGHWAY_LAYERS = 3
QA_OUT_PAD = 128   # lane-dense padded width for the 2-wide qa output


def _round_up(x, m):
  return (x + m - 1) // m * m


def _highway_qa_kernel(x_ref, gw_ref, gb_ref, tw_ref, tb_ref, qw_ref, qb_ref,
                       out_ref):
  """Highway encoder (3 layers) + qa_outputs for one tile of rows.

  x_ref  : (tm, H)   bf16  tile of hidden states
  gw_ref : (L, H, H) bf16  gate weights       (pre-transposed: x @ W)
  gb_ref : (L, 1, H) f32   gate biases
  tw_ref : (L, H, H) bf16  transform weights
  tb_ref : (L, 1, H) f32   transform biases
  qw_ref : (H, 128)  bf16  qa_outputs weight  (pre-transposed, zero-padded)
  qb_ref : (1, 128)  f32   qa_outputs bias    (zero-padded)
  out_ref: (tm, 128) f32   [start_logit, end_logit, 0...] per row
  """
  x = x_ref[...].astype(jnp.float32)

  # Static Python loop over the 3 highway layers (unrolled at trace time).
  for l in range(NUM_HIGHWAY_LAYERS):
    xb = x.astype(jnp.bfloat16)                       # MXU operands in bf16
    g = jax.nn.sigmoid(
        jnp.dot(xb, gw_ref[l], preferred_element_type=jnp.float32)
        + gb_ref[l])
    t = jax.nn.relu(
        jnp.dot(xb, tw_ref[l], preferred_element_type=jnp.float32)
        + tb_ref[l])
    # g*t + (1-g)*x  ==  x + g*(t - x)   (saves one mul + one sub)
    x = x + g * (t - x)

  logits = jnp.dot(x.astype(jnp.bfloat16), qw_ref[...],
                   preferred_element_type=jnp.float32) + qb_ref[...]
  out_ref[...] = logits.astype(out_ref.dtype)


def albert_linear_highway_forward(sequence_output, params, *, tm=256):
  """Runs HighwayEncoder(3, H) + qa_outputs on `sequence_output`.

  sequence_output: (B, S, H) float32  (stand-in for ALBERT last_hidden_state)
  Returns: (start_logits, end_logits), each (B, S) float32.
  """
  assert tm % 8 == 0, "tm must be a multiple of 8"
  B, S, H = sequence_output.shape
  rows = B * S

  # Effective row tile: cap at the (8-rounded) row count, pad rows to a
  # multiple of it so small inputs still work with a big default tm.
  tm_eff = min(tm, _round_up(rows, 8))
  rows_padded = _round_up(rows, tm_eff)

  x2d = sequence_output.reshape(rows, H)
  if rows_padded != rows:
    x2d = jnp.pad(x2d, ((0, rows_padded - rows), (0, 0)))
  x2d = x2d.astype(jnp.bfloat16)

  # Weight prep: pre-cast matmul operands to bf16; keep biases f32.
  gw = params["gate_w"].astype(jnp.bfloat16)            # (L, H, H)
  gb = params["gate_b"].astype(jnp.float32)             # (L, 1, H)
  tw = params["trans_w"].astype(jnp.bfloat16)           # (L, H, H)
  tb = params["trans_b"].astype(jnp.float32)            # (L, 1, H)
  # Pad qa_outputs to 128 output lanes (lane-dense stores).
  qw = jnp.pad(params["qa_w"], ((0, 0), (0, QA_OUT_PAD - 2))
               ).astype(jnp.bfloat16)                   # (H, 128)
  qb = jnp.pad(params["qa_b"], ((0, 0), (0, QA_OUT_PAD - 2))
               ).astype(jnp.float32)                    # (1, 128)

  grid = (rows_padded // tm_eff,)
  # Weights are small; keep them fully VMEM-resident (constant block index
  # => no per-step re-fetch).
  full = lambda a: pl.BlockSpec(a.shape, lambda i, _n=a.ndim: (0,) * _n)

  # Explicit VMEM budget: resident weights + double-buffered x/out tiles +
  # in-kernel f32 intermediates, with headroom.
  def _nbytes(*arrs):
    return sum(int(a.size) * a.dtype.itemsize for a in arrs)
  weight_bytes = _nbytes(gw, gb, tw, tb, qw, qb)
  buffer_bytes = 2 * tm_eff * H * 2 + 2 * tm_eff * QA_OUT_PAD * 4
  scratch_bytes = 4 * tm_eff * max(H, QA_OUT_PAD) * 4
  vmem_limit = min(int(1.5 * (weight_bytes + buffer_bytes + scratch_bytes))
                   + (8 << 20), 96 << 20)

  logits = pl.pallas_call(
      _highway_qa_kernel,
      out_shape=jax.ShapeDtypeStruct((rows_padded, QA_OUT_PAD), jnp.float32),
      grid_spec=pltpu.PrefetchScalarGridSpec(
          num_scalar_prefetch=0,
          grid=grid,
          in_specs=[
              pl.BlockSpec((tm_eff, H), lambda i: (i, 0)),   # x tile
              full(gw),                                      # gate weights
              full(gb),                                      # gate biases
              full(tw),                                      # transform weights
              full(tb),                                      # transform biases
              full(qw),                                      # qa weight (padded)
              full(qb),                                      # qa bias (padded)
          ],
          out_specs=pl.BlockSpec((tm_eff, QA_OUT_PAD), lambda i: (i, 0)),
      ),
      compiler_params=pltpu.CompilerParams(
          dimension_semantics=("parallel",),
          vmem_limit_bytes=vmem_limit),
  )(x2d, gw, gb, tw, tb, qw, qb)

  logits = logits[:rows, :2].reshape(B, S, 2)
  start_logits = logits[..., 0]
  end_logits = logits[..., 1]
  return start_logits, end_logits


def init_params(key, hidden_size):
  """Deterministic synthetic parameters matching the module's shapes."""
  keys = jax.random.split(key, 2 * NUM_HIGHWAY_LAYERS * 2 + 2)
  k = iter(keys)
  scale = 1.0 / jnp.sqrt(hidden_size)

  gate_w = jnp.stack([
      jax.random.uniform(next(k), (hidden_size, hidden_size),
                         jnp.float32, -scale, scale)
      for _ in range(NUM_HIGHWAY_LAYERS)
  ])
  gate_b = jnp.stack([
      jax.random.uniform(next(k), (1, hidden_size), jnp.float32, -scale, scale)
      for _ in range(NUM_HIGHWAY_LAYERS)
  ])
  trans_w = jnp.stack([
      jax.random.uniform(next(k), (hidden_size, hidden_size),
                         jnp.float32, -scale, scale)
      for _ in range(NUM_HIGHWAY_LAYERS)
  ])
  trans_b = jnp.stack([
      jax.random.uniform(next(k), (1, hidden_size), jnp.float32, -scale, scale)
      for _ in range(NUM_HIGHWAY_LAYERS)
  ])
  qa_w = jax.random.uniform(next(k), (hidden_size, 2), jnp.float32,
                            -scale, scale)
  qa_b = jax.random.uniform(next(k), (1, 2), jnp.float32, -scale, scale)

  return dict(gate_w=gate_w, gate_b=gate_b, trans_w=trans_w, trans_b=trans_b,
              qa_w=qa_w, qa_b=qa_b)


def reference_forward(sequence_output, params):
  """Pure-JAX f32 reference for correctness checking."""
  x = sequence_output
  for l in range(NUM_HIGHWAY_LAYERS):
    g = jax.nn.sigmoid(x @ params["gate_w"][l] + params["gate_b"][l])
    t = jax.nn.relu(x @ params["trans_w"][l] + params["trans_b"][l])
    x = g * t + (1.0 - g) * x
  logits = x @ params["qa_w"] + params["qa_b"]
  return logits[..., 0], logits[..., 1]


if __name__ == "__main__":
  B, S, H = 2, 8, 32   # small shapes: batch, seq, hidden (ALBERT stand-in)

  key = jax.random.PRNGKey(0)
  k_x, k_p = jax.random.split(key)

  # Stand-in for ALBERT last_hidden_state (the frozen backbone's output).
  sequence_output = jax.random.normal(k_x, (B, S, H), dtype=jnp.float32)
  params = init_params(k_p, H)

  start_logits, end_logits = jax.jit(
      functools.partial(albert_linear_highway_forward, tm=256)
  )(sequence_output, params)
  jax.block_until_ready((start_logits, end_logits))

  ref_start, ref_end = reference_forward(sequence_output, params)
  assert start_logits.shape == (B, S) and end_logits.shape == (B, S)
  # bf16 matmul operands (f32 accumulation) => loosened tolerance vs f32 ref.
  assert jnp.allclose(start_logits, ref_start, atol=3e-2, rtol=3e-2)
  assert jnp.allclose(end_logits, ref_end, atol=3e-2, rtol=3e-2)

  print("KERNEL_OK")
</pallas_src>

<mosaic_0001>
module attributes {stable_mosaic.version = 11 : i64} {
  func.func @_highway_qa_kernel(%arg0: i32, %arg1: memref<16x32xbf16, #tpu.memory_space<vmem>>, %arg2: memref<3x32x32xbf16, #tpu.memory_space<vmem>>, %arg3: memref<3x1x32xf32, #tpu.memory_space<vmem>>, %arg4: memref<3x32x32xbf16, #tpu.memory_space<vmem>>, %arg5: memref<3x1x32xf32, #tpu.memory_space<vmem>>, %arg6: memref<32x128xbf16, #tpu.memory_space<vmem>>, %arg7: memref<1x128xf32, #tpu.memory_space<vmem>>, %arg8: memref<16x128xf32, #tpu.memory_space<vmem>>) attributes {dimension_semantics = [#tpu.dimension_semantics<parallel>], iteration_bounds = array<i64: 1>, scalar_prefetch = 0 : i64, scratch_operands = 0 : i64, tpu.core_type = #tpu.core_type<tc>, window_params = [{transform_indices = @transform_0, window_bounds = array<i64: 16, 32>}, {pipeline_mode = #tpu.pipeline_mode<synchronous>, transform_indices = @transform_1, window_bounds = array<i64: 3, 32, 32>}, {pipeline_mode = #tpu.pipeline_mode<synchronous>, transform_indices = @transform_2, window_bounds = array<i64: 3, 1, 32>}, {pipeline_mode = #tpu.pipeline_mode<synchronous>, transform_indices = @transform_3, window_bounds = array<i64: 3, 32, 32>}, {pipeline_mode = #tpu.pipeline_mode<synchronous>, transform_indices = @transform_4, window_bounds = array<i64: 3, 1, 32>}, {pipeline_mode = #tpu.pipeline_mode<synchronous>, transform_indices = @transform_5, window_bounds = array<i64: 32, 128>}, {pipeline_mode = #tpu.pipeline_mode<synchronous>, transform_indices = @transform_6, window_bounds = array<i64: 1, 128>}, {transform_indices = @transform_7, window_bounds = array<i64: 16, 128>}]} {
    %c0 = arith.constant 0 : index
    %c0_0 = arith.constant 0 : index
    %0 = vector.load %arg1[%c0, %c0_0] : memref<16x32xbf16, #tpu.memory_space<vmem>>, vector<16x32xbf16>
    %1 = arith.extf %0 : vector<16x32xbf16> to vector<16x32xf32>
    %2 = arith.truncf %1 : vector<16x32xf32> to vector<16x32xbf16>
    %c0_1 = arith.constant 0 : index
    %c0_2 = arith.constant 0 : index
    %c0_3 = arith.constant 0 : index
    %3 = vector.load %arg2[%c0_1, %c0_2, %c0_3] : memref<3x32x32xbf16, #tpu.memory_space<vmem>>, vector<1x32x32xbf16>
    %4 = vector.shape_cast %3 : vector<1x32x32xbf16> to vector<32x32xbf16>
    %cst = arith.constant dense<0.000000e+00> : vector<16x32xf32>
    %5 = tpu.matmul %2, %4, %cst {dimension_numbers = #tpu.dot_dimension_numbers<[1], [0], [0], [1], [0, 0, 1, 1], [], []>} : vector<16x32xbf16>, vector<32x32xbf16>, vector<16x32xf32> -> vector<16x32xf32>
    %c0_4 = arith.constant 0 : index
    %c0_5 = arith.constant 0 : index
    %c0_6 = arith.constant 0 : index
    %6 = vector.load %arg3[%c0_4, %c0_5, %c0_6] : memref<3x1x32xf32, #tpu.memory_space<vmem>>, vector<1x1x32xf32>
    %7 = vector.shape_cast %6 : vector<1x1x32xf32> to vector<1x32xf32>
    %8 = vector.broadcast %7 : vector<1x32xf32> to vector<16x32xf32>
    %9 = arith.addf %5, %8 : vector<16x32xf32>
    %10 = arith.negf %9 : vector<16x32xf32>
    %11 = math.exp %10 : vector<16x32xf32>
    %cst_7 = arith.constant 1.000000e+00 : f32
    %12 = vector.broadcast %cst_7 : f32 to vector<16x32xf32>
    %13 = arith.addf %12, %11 : vector<16x32xf32>
    %14 = arith.divf %12, %13 : vector<16x32xf32>
    %c0_8 = arith.constant 0 : index
    %c0_9 = arith.constant 0 : index
    %c0_10 = arith.constant 0 : index
    %15 = vector.load %arg4[%c0_8, %c0_9, %c0_10] : memref<3x32x32xbf16, #tpu.memory_space<vmem>>, vector<1x32x32xbf16>
    %16 = vector.shape_cast %15 : vector<1x32x32xbf16> to vector<32x32xbf16>
    %cst_11 = arith.constant dense<0.000000e+00> : vector<16x32xf32>
    %17 = tpu.matmul %2, %16, %cst_11 {dimension_numbers = #tpu.dot_dimension_numbers<[1], [0], [0], [1], [0, 0, 1, 1], [], []>} : vector<16x32xbf16>, vector<32x32xbf16>, vector<16x32xf32> -> vector<16x32xf32>
    %c0_12 = arith.constant 0 : index
    %c0_13 = arith.constant 0 : index
    %c0_14 = arith.constant 0 : index
    %18 = vector.load %arg5[%c0_12, %c0_13, %c0_14] : memref<3x1x32xf32, #tpu.memory_space<vmem>>, vector<1x1x32xf32>
    %19 = vector.shape_cast %18 : vector<1x1x32xf32> to vector<1x32xf32>
    %20 = vector.broadcast %19 : vector<1x32xf32> to vector<16x32xf32>
    %21 = arith.addf %17, %20 : vector<16x32xf32>
    %cst_15 = arith.constant 0.000000e+00 : f32
    %22 = vector.broadcast %cst_15 : f32 to vector<16x32xf32>
    %23 = arith.maximumf %21, %22 : vector<16x32xf32>
    %24 = arith.subf %23, %1 : vector<16x32xf32>
    %25 = arith.mulf %14, %24 : vector<16x32xf32>
    %26 = arith.addf %1, %25 : vector<16x32xf32>
    %27 = arith.truncf %26 : vector<16x32xf32> to vector<16x32xbf16>
    %c1 = arith.constant 1 : index
    %c0_16 = arith.constant 0 : index
    %c0_17 = arith.constant 0 : index
    %28 = vector.load %arg2[%c1, %c0_16, %c0_17] : memref<3x32x32xbf16, #tpu.memory_space<vmem>>, vector<1x32x32xbf16>
    %29 = vector.shape_cast %28 : vector<1x32x32xbf16> to vector<32x32xbf16>
    %cst_18 = arith.constant dense<0.000000e+00> : vector<16x32xf32>
    %30 = tpu.matmul %27, %29, %cst_18 {dimension_numbers = #tpu.dot_dimension_numbers<[1], [0], [0], [1], [0, 0, 1, 1], [], []>} : vector<16x32xbf16>, vector<32x32xbf16>, vector<16x32xf32> -> vector<16x32xf32>
    %c1_19 = arith.constant 1 : index
    %c0_20 = arith.constant 0 : index
    %c0_21 = arith.constant 0 : index
    %31 = vector.load %arg3[%c1_19, %c0_20, %c0_21] : memref<3x1x32xf32, #tpu.memory_space<vmem>>, vector<1x1x32xf32>
    %32 = vector.shape_cast %31 : vector<1x1x32xf32> to vector<1x32xf32>
    %33 = vector.broadcast %32 : vector<1x32xf32> to vector<16x32xf32>
    %34 = arith.addf %30, %33 : vector<16x32xf32>
    %35 = arith.negf %34 : vector<16x32xf32>
    %36 = math.exp %35 : vector<16x32xf32>
    %cst_22 = arith.constant 1.000000e+00 : f32
    %37 = vector.broadcast %cst_22 : f32 to vector<16x32xf32>
    %38 = arith.addf %37, %36 : vector<16x32xf32>
    %39 = arith.divf %37, %38 : vector<16x32xf32>
    %c1_23 = arith.constant 1 : index
    %c0_24 = arith.constant 0 : index
    %c0_25 = arith.constant 0 : index
    %40 = vector.load %arg4[%c1_23, %c0_24, %c0_25] : memref<3x32x32xbf16, #tpu.memory_space<vmem>>, vector<1x32x32xbf16>
    %41 = vector.shape_cast %40 : vector<1x32x32xbf16> to vector<32x32xbf16>
    %cst_26 = arith.constant dense<0.000000e+00> : vector<16x32xf32>
    %42 = tpu.matmul %27, %41, %cst_26 {dimension_numbers = #tpu.dot_dimension_numbers<[1], [0], [0], [1], [0, 0, 1, 1], [], []>} : vector<16x32xbf16>, vector<32x32xbf16>, vector<16x32xf32> -> vector<16x32xf32>
    %c1_27 = arith.constant 1 : index
    %c0_28 = arith.constant 0 : index
    %c0_29 = arith.constant 0 : index
    %43 = vector.load %arg5[%c1_27, %c0_28, %c0_29] : memref<3x1x32xf32, #tpu.memory_space<vmem>>, vector<1x1x32xf32>
    %44 = vector.shape_cast %43 : vector<1x1x32xf32> to vector<1x32xf32>
    %45 = vector.broadcast %44 : vector<1x32xf32> to vector<16x32xf32>
    %46 = arith.addf %42, %45 : vector<16x32xf32>
    %cst_30 = arith.constant 0.000000e+00 : f32
    %47 = vector.broadcast %cst_30 : f32 to vector<16x32xf32>
    %48 = arith.maximumf %46, %47 : vector<16x32xf32>
    %49 = arith.subf %48, %26 : vector<16x32xf32>
    %50 = arith.mulf %39, %49 : vector<16x32xf32>
    %51 = arith.addf %26, %50 : vector<16x32xf32>
    %52 = arith.truncf %51 : vector<16x32xf32> to vector<16x32xbf16>
    %c2 = arith.constant 2 : index
    %c0_31 = arith.constant 0 : index
    %c0_32 = arith.constant 0 : index
    %53 = vector.load %arg2[%c2, %c0_31, %c0_32] : memref<3x32x32xbf16, #tpu.memory_space<vmem>>, vector<1x32x32xbf16>
    %54 = vector.shape_cast %53 : vector<1x32x32xbf16> to vector<32x32xbf16>
    %cst_33 = arith.constant dense<0.000000e+00> : vector<16x32xf32>
    %55 = tpu.matmul %52, %54, %cst_33 {dimension_numbers = #tpu.dot_dimension_numbers<[1], [0], [0], [1], [0, 0, 1, 1], [], []>} : vector<16x32xbf16>, vector<32x32xbf16>, vector<16x32xf32> -> vector<16x32xf32>
    %c2_34 = arith.constant 2 : index
    %c0_35 = arith.constant 0 : index
    %c0_36 = arith.constant 0 : index
    %56 = vector.load %arg3[%c2_34, %c0_35, %c0_36] : memref<3x1x32xf32, #tpu.memory_space<vmem>>, vector<1x1x32xf32>
    %57 = vector.shape_cast %56 : vector<1x1x32xf32> to vector<1x32xf32>
    %58 = vector.broadcast %57 : vector<1x32xf32> to vector<16x32xf32>
    %59 = arith.addf %55, %58 : vector<16x32xf32>
    %60 = arith.negf %59 : vector<16x32xf32>
    %61 = math.exp %60 : vector<16x32xf32>
    %cst_37 = arith.constant 1.000000e+00 : f32
    %62 = vector.broadcast %cst_37 : f32 to vector<16x32xf32>
    %63 = arith.addf %62, %61 : vector<16x32xf32>
    %64 = arith.divf %62, %63 : vector<16x32xf32>
    %c2_38 = arith.constant 2 : index
    %c0_39 = arith.constant 0 : index
    %c0_40 = arith.constant 0 : index
    %65 = vector.load %arg4[%c2_38, %c0_39, %c0_40] : memref<3x32x32xbf16, #tpu.memory_space<vmem>>, vector<1x32x32xbf16>
    %66 = vector.shape_cast %65 : vector<1x32x32xbf16> to vector<32x32xbf16>
    %cst_41 = arith.constant dense<0.000000e+00> : vector<16x32xf32>
    %67 = tpu.matmul %52, %66, %cst_41 {dimension_numbers = #tpu.dot_dimension_numbers<[1], [0], [0], [1], [0, 0, 1, 1], [], []>} : vector<16x32xbf16>, vector<32x32xbf16>, vector<16x32xf32> -> vector<16x32xf32>
    %c2_42 = arith.constant 2 : index
    %c0_43 = arith.constant 0 : index
    %c0_44 = arith.constant 0 : index
    %68 = vector.load %arg5[%c2_42, %c0_43, %c0_44] : memref<3x1x32xf32, #tpu.memory_space<vmem>>, vector<1x1x32xf32>
    %69 = vector.shape_cast %68 : vector<1x1x32xf32> to vector<1x32xf32>
    %70 = vector.broadcast %69 : vector<1x32xf32> to vector<16x32xf32>
    %71 = arith.addf %67, %70 : vector<16x32xf32>
    %cst_45 = arith.constant 0.000000e+00 : f32
    %72 = vector.broadcast %cst_45 : f32 to vector<16x32xf32>
    %73 = arith.maximumf %71, %72 : vector<16x32xf32>
    %74 = arith.subf %73, %51 : vector<16x32xf32>
    %75 = arith.mulf %64, %74 : vector<16x32xf32>
    %76 = arith.addf %51, %75 : vector<16x32xf32>
    %77 = arith.truncf %76 : vector<16x32xf32> to vector<16x32xbf16>
    %c0_46 = arith.constant 0 : index
    %c0_47 = arith.constant 0 : index
    %78 = vector.load %arg6[%c0_46, %c0_47] : memref<32x128xbf16, #tpu.memory_space<vmem>>, vector<32x128xbf16>
    %cst_48 = arith.constant dense<0.000000e+00> : vector<16x128xf32>
    %79 = tpu.matmul %77, %78, %cst_48 {dimension_numbers = #tpu.dot_dimension_numbers<[1], [0], [0], [1], [0, 0, 1, 1], [], []>} : vector<16x32xbf16>, vector<32x128xbf16>, vector<16x128xf32> -> vector<16x128xf32>
    %c0_49 = arith.constant 0 : index
    %c0_50 = arith.constant 0 : index
    %80 = vector.load %arg7[%c0_49, %c0_50] : memref<1x128xf32, #tpu.memory_space<vmem>>, vector<1x128xf32>
    %81 = vector.broadcast %80 : vector<1x128xf32> to vector<16x128xf32>
    %82 = arith.addf %79, %81 : vector<16x128xf32>
    %c0_51 = arith.constant 0 : index
    %c0_52 = arith.constant 0 : index
    %83 = vector.load %arg8[%c0_51, %c0_52] : memref<16x128xf32, #tpu.memory_space<vmem>>, vector<16x128xf32>
    tpu.vector_store %arg8[%c0_51, %c0_52], %82 {strides = array<i32>} : memref<16x128xf32, #tpu.memory_space<vmem>>, vector<16x128xf32>,
    return
  }
  func.func @transform_0(%arg0: i32) -> (i32, i32) {
    %c0_i32 = arith.constant 0 : i32
    %c0_i32_0 = arith.constant 0 : i32
    return %arg0, %c0_i32 : i32, i32
  }
  func.func @transform_1(%arg0: i32) -> (i32, i32, i32) {
    %c0_i32 = arith.constant 0 : i32
    %c0_i32_0 = arith.constant 0 : i32
    %c0_i32_1 = arith.constant 0 : i32
    %c0_i32_2 = arith.constant 0 : i32
    return %c0_i32, %c0_i32_0, %c0_i32_1 : i32, i32, i32
  }
  func.func @transform_2(%arg0: i32) -> (i32, i32, i32) {
    %c0_i32 = arith.constant 0 : i32
    %c0_i32_0 = arith.constant 0 : i32
    %c0_i32_1 = arith.constant 0 : i32
    %c0_i32_2 = arith.constant 0 : i32
    return %c0_i32, %c0_i32_0, %c0_i32_1 : i32, i32, i32
  }
  func.func @transform_3(%arg0: i32) -> (i32, i32, i32) {
    %c0_i32 = arith.constant 0 : i32
    %c0_i32_0 = arith.constant 0 : i32
    %c0_i32_1 = arith.constant 0 : i32
    %c0_i32_2 = arith.constant 0 : i32
    return %c0_i32, %c0_i32_0, %c0_i32_1 : i32, i32, i32
  }
  func.func @transform_4(%arg0: i32) -> (i32, i32, i32) {
    %c0_i32 = arith.constant 0 : i32
    %c0_i32_0 = arith.constant 0 : i32
    %c0_i32_1 = arith.constant 0 : i32
    %c0_i32_2 = arith.constant 0 : i32
    return %c0_i32, %c0_i32_0, %c0_i32_1 : i32, i32, i32
  }
  func.func @transform_5(%arg0: i32) -> (i32, i32) {
    %c0_i32 = arith.constant 0 : i32
    %c0_i32_0 = arith.constant 0 : i32
    %c0_i32_1 = arith.constant 0 : i32
    return %c0_i32, %c0_i32_0 : i32, i32
  }
  func.func @transform_6(%arg0: i32) -> (i32, i32) {
    %c0_i32 = arith.constant 0 : i32
    %c0_i32_0 = arith.constant 0 : i32
    %c0_i32_1 = arith.constant 0 : i32
    return %c0_i32, %c0_i32_0 : i32, i32
  }
  func.func @transform_7(%arg0: i32) -> (i32, i32) {
    %c0_i32 = arith.constant 0 : i32
    %c0_i32_0 = arith.constant 0 : i32
    return %arg0, %c0_i32 : i32, i32
  }
}

</mosaic_0001>

<bundles_post_ra>
// kernel: albert_linear_highway_forward.1
= control target key start
LH: loop header
LB: loop body
LE: loop exit
PB: predicated region body
PF: predicated region fallthrough
CT: control target
= control target key end

     0   :  { %v748_v0 = vmov 0.0   ;;  %vm749_vm0 = vmmov 0   ;;  %vm59_vm1 = vcmask 261120   ;;  %s903_s1 = inlined_call_operand.vmem [shape: bf16[3,32,32], index: 1, kind: input, shape index: {}]   ;;  %s904_s0 = inlined_call_operand.vmem [shape: bf16[16,32], index: 0, kind: input, shape index: {}]   ;;  %s905_s3 = inlined_call_operand.vmem [shape: bf16[3,32,32], index: 3, kind: input, shape index: {}]   ;;  %s906_s2 = inlined_call_operand.vmem [shape: f32[3,1,32], index: 2, kind: input, shape index: {}]   ;;  %s907_s4 = inlined_call_operand.vmem [shape: f32[3,1,32], index: 4, kind: input, shape index: {}]   ;;  %s908_s5 = inlined_call_operand.vmem [shape: bf16[32,128], index: 5, kind: input, shape index: {}]   ;;  %s909_s6 = inlined_call_operand.vmem [shape: f32[1,128], index: 6, kind: input, shape index: {}]   ;;  %s910_s7 = inlined_call_operand.vmem [shape: f32[16,128], index: 7, kind: output, shape index: {}]  }
   0x1   :  { %650 = vmatprep.subr.bf16.mxu0 %v748_v0  ;;  %v708_v1 = vld [vmem:[%s903_s1] sm:$0xff]   ;;  %654 = vmatprep.mubr.msk.bf16.mxu0 %vm749_vm0, %v748_v0  ;;  %v709_v2 = vld [vmem:[%s903_s1 + $0x8] sm:$0xff]   ;;  %v713_v6 = vld [vmem:[%s903_s1 + $0x10] sm:$0xff]  }
   0x2   :  { %658 = vmatprep.subr.bf16.mxu1 %v748_v0  ;;  %662 = vmatprep.mubr.msk.bf16.mxu1 %vm749_vm0, %v748_v0  ;;  %v805_v3 = vld [vmem:[%s904_s0] sm:$0xff]   ;;  %v712_v5 = vld [vmem:[%s905_s3 + $0x8] sm:$0xff]   ;;  %v714_v7 = vld [vmem:[%s905_s3 + $0x10] sm:$0xff]  }
   0x3   :  { %651 = vmatpush3.bf16.msra.mxu0 %v708_v1  ;;  %v711_v4 = vld [vmem:[%s905_s3] sm:$0xff]   ;;  %v715_v8 = vld [vmem:[%s903_s1 + $0x18] sm:$0xff]   ;;  %v29_v29 = vunpack.c.l.bf16 %v805_v3  ;;  %v30_v33 = vunpack.c.h.bf16 %v805_v3  ;;  %v719_v45 = vld [vmem:[%s903_s1 + $0x28] sm:$0xff]  }
   0x4   :  { %652 = vmatprep.subr.bf16.mxu0 %v748_v0  ;;  %659 = vmatpush3.bf16.msra.mxu1 %v711_v4  ;;  %v716_v9 = vld [vmem:[%s905_s3 + $0x18] sm:$0xff]   ;;  %v574_v10 = vld [vmem:[%s906_s2] ss:$0 sm:$0xff]  ;;  %v720_v46 = vld [vmem:[%s905_s3 + $0x28] sm:$0xff]  }
   0x5   :  { %660 = vmatprep.subr.bf16.mxu1 %v748_v0  ;;  %v581_v23 = vld [vmem:[%s907_s4] ss:$0 sm:$0xff]  ;;  %v590_v47 = vld [vmem:[%s906_s2 + $0x1] ss:$0 sm:$0xff] }
   0x6   :  { %v717_v43 = vld [vmem:[%s903_s1 + $0x20] sm:$0xff]  }
   0x7   :  { %653 = vmatpush3.bf16.msra.mxu0 %v709_v2  ;;  %v718_v44 = vld [vmem:[%s905_s3 + $0x20] sm:$0xff]  }
   0x8   :  { %666 = vmatprep.subr.bf16.mxu0 %v748_v0  ;;  %661 = vmatpush3.bf16.msra.mxu1 %v712_v5  ;;  %v601_v62 = vld [vmem:[%s907_s4 + $0x1] ss:$0 sm:$0xff] }
   0x9   :  { %674 = vmatprep.subr.bf16.mxu1 %v748_v0 }
   0xa   :  { %655 = vmatmul.mubr.msk.bf16.vlgmr.msra.gmra.mrb[0].mxu0 %vm59_vm1, %v805_v3 }
   0xb   :  { %670 = vmatprep.mubr.msk.bf16.mxu0 %vm749_vm0, %v748_v0  ;;  %663 = vmatmul.mubr.msk.bf16.vlgmr.msra.gmra.mrb[0].mxu1 %vm59_vm1, %v805_v3 }
   0xc   :  { %678 = vmatprep.mubr.msk.bf16.mxu1 %vm749_vm0, %v748_v0  ;;  %667 = vmatpush3.bf16.msra.mxu0 %v713_v6 }
   0xd   :  { %675 = vmatpush3.bf16.msra.mxu1 %v714_v7  ;;  %668 = vmatprep.subr.bf16.mxu0 %v748_v0 }
   0xe   :  { %676 = vmatprep.subr.bf16.mxu1 %v748_v0 }
  0x10   :  { %669 = vmatpush3.bf16.msra.mxu0 %v715_v8 }
  0x11   :  { %677 = vmatpush3.bf16.msra.mxu1 %v716_v9  ;;  %682 = vmatprep.subr.bf16.mxu0 %v748_v0 }
  0x12   :  { %690 = vmatprep.subr.bf16.mxu1 %v748_v0 }
  0xdd   :  { %v97_v11 = vpop.f32.mrb[0].mxu0 }
  0xde   :  { %v98_v12 = vadd.f32 %v574_v10, %v97_v11  ;;  %v656_v13 = vpop.f32.mrb[1].mxu0  ;;  %v173_v18 = vpop.f32.mrb[0].mxu1 }
  0xdf   :  { %v100_v14 = vpop.f32.mrb[2].mxu0  ;;  %v664_v19 = vpop.f32.mrb[1].mxu1  ;;  %v174_v27 = vadd.f32 %v581_v23, %v173_v18 }
  0xe0   :  { %v579_v15 = vmul.f32 -1.442695, %v98_v12  ;;  %v101_v16 = vadd.f32 %v574_v10, %v100_v14  ;;  %v657_v17 = vpop.f32.mrb[3].mxu0  ;;  %v176_v21 = vpop.f32.mrb[2].mxu1 }
  0xe1   :  { %v665_v22 = vpop.f32.mrb[3].mxu1  ;;  %v180_v30 = vmax.f32 %v174_v27, 0.0  ;;  %v177_v31 = vadd.f32 %v581_v23, %v176_v21  ;;  %v610_v17 = vld [vmem:[%s906_s2 + $0x2] ss:$0 sm:$0xff] }
  0xe2   :  { %724 = vpow2.f32 %v579_v15  ;;  %v580_v20 = vmul.f32 -1.442695, %v101_v16  ;;  %v721_v15 = vld [vmem:[%s908_s5] sm:$0xff]   ;;  %v722_v16 = vld [vmem:[%s908_s5 + $0x8] sm:$0xff]  }
  0xe3   :  { %v182_v32 = vsub.f32 %v180_v30, %v29_v29  ;;  %v181_v34 = vmax.f32 %v177_v31, 0.0  ;;  %v621_v31 = vld [vmem:[%s907_s4 + $0x2] ss:$0 sm:$0xff] }
  0xe4   :  { %726 = vpow2.f32 %v580_v20 }
  0xe5   :  { %v183_v37 = vsub.f32 %v181_v34, %v30_v33 }
  0xec   :  { %v725_v24 = vpop.eup %724 }
  0xed   :  { %v110_v25 = vadd.f32 1.0, %v725_v24 }
  0xee   :  { %v727_v26 = vpop.eup %726 }
  0xef   :  { %728 = vrcp.f32 %v110_v25  ;;  %v111_v28 = vadd.f32 1.0, %v727_v26 }
  0xf1   :  { %730 = vrcp.f32 %v111_v28 }
  0xf9   :  { %v729_v35 = vpop.eup %728 }
  0xfa   :  { %v184_v36 = vmul.f32 %v729_v35, %v182_v32 }
  0xfb   :  { %v731_v38 = vpop.eup %730 }
  0xfc   :  { %v185_v39 = vmul.f32 %v731_v38, %v183_v37  ;;  %v186_v40 = vadd.f32 %v184_v36, %v29_v29 }
  0xfe   :  { %v187_v41 = vadd.f32 %v185_v39, %v30_v33 }
 0x100   :  { %v188_v42 = vpack.c.bf16 %v187_v41, %v186_v40 }
 0x102   :  { %671 = vmatmul.mubr.msk.bf16.vlgmr.msra.gmra.mrb[4].mxu0 %vm59_vm1, %v188_v42  ;;  %679 = vmatmul.mubr.msk.bf16.vlgmr.msra.gmra.mrb[4].mxu1 %vm59_vm1, %v188_v42 }
 0x103   :  { %686 = vmatprep.mubr.msk.bf16.mxu0 %vm749_vm0, %v748_v0  ;;  %694 = vmatprep.mubr.msk.bf16.mxu1 %vm749_vm0, %v748_v0 }
 0x104   :  { %683 = vmatpush3.bf16.msra.mxu0 %v717_v43  ;;  %691 = vmatpush3.bf16.msra.mxu1 %v718_v44 }
 0x105   :  { %684 = vmatprep.subr.bf16.mxu0 %v748_v0  ;;  %692 = vmatprep.subr.bf16.mxu1 %v748_v0 }
 0x108   :  { %685 = vmatpush3.bf16.msra.mxu0 %v719_v45  ;;  %693 = vmatpush3.bf16.msra.mxu1 %v720_v46 }
 0x109   :  { %698 = vmatprep.subr.bf16.mxu0 %v748_v0 }
 0x1d5   :  { %v251_v48 = vpop.f32.mrb[4].mxu0  ;;  %v329_v49 = vpop.f32.mrb[4].mxu1 }
 0x1d6   :  { %v252_v50 = vadd.f32 %v590_v47, %v251_v48  ;;  %v672_v51 = vpop.f32.mrb[5].mxu0  ;;  %v680_v52 = vpop.f32.mrb[5].mxu1  ;;  %v330_v2 = vadd.f32 %v601_v62, %v329_v49 }
 0x1d7   :  { %v254_v53 = vpop.f32.mrb[6].mxu0  ;;  %v332_v54 = vpop.f32.mrb[6].mxu1 }
 0x1d8   :  { %v594_v55 = vmul.f32 -1.442695, %v252_v50  ;;  %v255_v56 = vadd.f32 %v590_v47, %v254_v53  ;;  %v673_v57 = vpop.f32.mrb[7].mxu0  ;;  %v681_v58 = vpop.f32.mrb[7].mxu1  ;;  %v333_v3 = vadd.f32 %v601_v62, %v332_v54  ;;  %v336_v4 = vmax.f32 %v330_v2, 0.0 }
 0x1d9   :  { %v625_v47 = vld [vmem:[%s909_s6] ss:$0 sm:$0xff] }
 0x1da   :  { %732 = vpow2.f32 %v594_v55  ;;  %v595_v59 = vmul.f32 -1.442695, %v255_v56  ;;  %v337_v5 = vmax.f32 %v333_v3, 0.0  ;;  %v338_v6 = vsub.f32 %v336_v4, %v186_v40 }
 0x1dc   :  { %734 = vpow2.f32 %v595_v59  ;;  %v339_v9 = vsub.f32 %v337_v5, %v187_v41 }
 0x1e4   :  { %v733_v60 = vpop.eup %732 }
 0x1e5   :  { %v264_v61 = vadd.f32 1.0, %v733_v60 }
 0x1e6   :  { %v735_v63 = vpop.eup %734 }
 0x1e7   :  { %736 = vrcp.f32 %v264_v61  ;;  %v265_v1 = vadd.f32 1.0, %v735_v63 }
 0x1e9   :  { %738 = vrcp.f32 %v265_v1 }
 0x1f1   :  { %v737_v7 = vpop.eup %736 }
 0x1f2   :  { %v340_v8 = vmul.f32 %v737_v7, %v338_v6 }
 0x1f3   :  { %v739_v10 = vpop.eup %738 }
 0x1f4   :  { %v341_v11 = vmul.f32 %v739_v10, %v339_v9  ;;  %v342_v12 = vadd.f32 %v340_v8, %v186_v40 }
 0x1f6   :  { %v343_v13 = vadd.f32 %v341_v11, %v187_v41 }
 0x1f8   :  { %v344_v14 = vpack.c.bf16 %v343_v13, %v342_v12 }
 0x1fa   :  { %687 = vmatmul.mubr.msk.bf16.vlgmr.msra.gmra.mrb[8].mxu0 %vm59_vm1, %v344_v14  ;;  %695 = vmatmul.mubr.msk.bf16.vlgmr.msra.gmra.mrb[8].mxu1 %vm59_vm1, %v344_v14 }
 0x1fb   :  { %702 = vmatprep.mubr.msk.bf16.mxu0 %vm749_vm0, %v748_v0  ;;  %699 = vmatpush3.bf16.msra.mxu0 %v721_v15 }
 0x1fc   :  { %700 = vmatprep.subr.bf16.mxu0 %v748_v0 }
 0x1ff   :  { %701 = vmatpush3.bf16.msra.mxu0 %v722_v16 }
 0x2cd   :  { %v407_v18 = vpop.f32.mrb[8].mxu0  ;;  %v485_v19 = vpop.f32.mrb[8].mxu1 }
 0x2ce   :  { %v408_v20 = vadd.f32 %v610_v17, %v407_v18  ;;  %v688_v21 = vpop.f32.mrb[9].mxu0  ;;  %v696_v22 = vpop.f32.mrb[9].mxu1  ;;  %v486_v34 = vadd.f32 %v621_v31, %v485_v19 }
 0x2cf   :  { %v410_v23 = vpop.f32.mrb[10].mxu0  ;;  %v488_v24 = vpop.f32.mrb[10].mxu1 }
 0x2d0   :  { %v614_v25 = vmul.f32 -1.442695, %v408_v20  ;;  %v411_v26 = vadd.f32 %v610_v17, %v410_v23  ;;  %v689_v27 = vpop.f32.mrb[11].mxu0  ;;  %v697_v0 = vpop.f32.mrb[11].mxu1  ;;  %v489_v35 = vadd.f32 %v621_v31, %v488_v24  ;;  %v492_v36 = vmax.f32 %v486_v34, 0.0 }
 0x2d2   :  { %740 = vpow2.f32 %v614_v25  ;;  %v615_v28 = vmul.f32 -1.442695, %v411_v26  ;;  %v493_v37 = vmax.f32 %v489_v35, 0.0  ;;  %v494_v38 = vsub.f32 %v492_v36, %v342_v12 }
 0x2d4   :  { %742 = vpow2.f32 %v615_v28  ;;  %v495_v41 = vsub.f32 %v493_v37, %v343_v13 }
 0x2dc   :  { %v741_v29 = vpop.eup %740 }
 0x2dd   :  { %v420_v30 = vadd.f32 1.0, %v741_v29 }
 0x2de   :  { %v743_v32 = vpop.eup %742 }
 0x2df   :  { %744 = vrcp.f32 %v420_v30  ;;  %v421_v33 = vadd.f32 1.0, %v743_v32 }
 0x2e1   :  { %746 = vrcp.f32 %v421_v33 }
 0x2e9   :  { %v745_v39 = vpop.eup %744 }
 0x2ea   :  { %v496_v40 = vmul.f32 %v745_v39, %v494_v38 }
 0x2eb   :  { %v747_v42 = vpop.eup %746 }
 0x2ec   :  { %v497_v43 = vmul.f32 %v747_v42, %v495_v41  ;;  %v498_v44 = vadd.f32 %v496_v40, %v342_v12 }
 0x2ee   :  { %v499_v45 = vadd.f32 %v497_v43, %v343_v13 }
 0x2f0   :  { %v500_v46 = vpack.c.bf16 %v499_v45, %v498_v44 }
 0x2f2   :  { %703 = vmatmul.mubr.msk.bf16.vlgmr.msra.gmra.mrb[12].mxu0 %vm59_vm1, %v500_v46 }
 0x3c5   :  { %v561_v48 = vpop.f32.mrb[12].mxu0 }
 0x3c6   :  { %v562_v49 = vadd.f32 %v625_v47, %v561_v48  ;;  %v704_v50 = vpop.f32.mrb[13].mxu0 }
 0x3c7   :  { %v564_v51 = vpop.f32.mrb[14].mxu0 }
 0x3c8   :  { %568 = vst [vmem:[%s910_s7] sm:$0xff] %v562_v49  ;;  %v565_v52 = vadd.f32 %v625_v47, %v564_v51  ;;  %v705_v53 = vpop.f32.mrb[15].mxu0 }
 0x3ca   :  { %569 = vst [vmem:[%s910_s7 + $0x8] sm:$0xff] %v565_v52 }

</bundles_post_ra>
